<compile_context>
chip_gen: v7x
topology: tpu7x:2x2x1
jax: 0.10.0
libtpu: 0.0.40
codegen_flags: <defaults>
</compile_context>

<pallas_src>
import functools

import jax
import jax.numpy as jnp
from jax import lax
from jax.experimental import pallas as pl
from jax.experimental.pallas import tpu as pltpu

_HALO = 8      # sublane granule for the row halo; supports kh - 1 <= 8
_LANE = 128    # lane width


def _round_up(n, m):
    return (n + m - 1) // m * m


def _shift_up(v, k, axis):
    """result[idx] = v[(idx + k) % size] along `axis` (XLU rotate, no copies)."""
    size = v.shape[axis]
    s = (size - k) % size
    if s == 0:
        return v
    return pltpu.roll(v, s, axis=axis)


def corr2d_bias_kernel(w_ref, b_ref, x_ref, *rest, kh, kw, out_w_pad):
    """One (tile_h, out_w_pad) output tile of valid 2-D cross-correlation + bias.

    w_ref:    SMEM (kh, kw)              scalar taps
    b_ref:    SMEM (1,)                  scalar bias
    x_ref:    VMEM (tile_h, w_in_pad)    input rows [r*tile_h, (r+1)*tile_h)
    halo_ref: VMEM (8, w_in_pad)         next 8 input rows (only when kh > 1)
    o_ref:    VMEM (tile_h, out_w_pad)   output rows [r*tile_h, (r+1)*tile_h)
    """
    if kh > 1:
        halo_ref, o_ref = rest
    else:
        halo_ref = None
        (o_ref,) = rest

    tile_h = o_ref.shape[0]
    x = x_ref[...]                                   # (tile_h, w_in_pad) f32

    def add_row_taps(acc, slab, i):
        # slab is already row-shifted by i; add the kw column taps of row i.
        for j in range(kw):
            t = _shift_up(slab, j, 1)                # lane rotate (XLU slot)
            acc = acc + w_ref[i, j] * t[:, :out_w_pad]   # aligned prefix slice
        return acc

    # Main pass.  The row shift by i wraps around inside the tile; for kh > 1
    # the wrapped values only land in the bottom <= 8 rows, which the fixup
    # pass below recomputes exactly and overwrites.  Bias folded into the init.
    acc = jnp.full((tile_h, out_w_pad), b_ref[0], dtype=jnp.float32)
    for i in range(kh):
        acc = add_row_taps(acc, _shift_up(x, i, 0), i)
    o_ref[...] = acc

    if kh > 1:
        # Bottom-8-row fixup: those output rows read input rows that spill into
        # the halo block.  Everything here is tiny (8 rows) and sublane-aligned
        # (tile_h is a multiple of 8).
        xb = x[tile_h - _HALO:, :]                   # last 8 rows of the tile
        hb = halo_ref[...]                           # next 8 rows (halo)
        rows8 = lax.broadcasted_iota(jnp.int32, xb.shape, 0)
        accb = jnp.full((_HALO, out_w_pad), b_ref[0], dtype=jnp.float32)
        for i in range(kh):
            if i == 0:
                bot = xb
            else:
                bot = jnp.where(rows8 < _HALO - i,
                                _shift_up(xb, i, 0), _shift_up(hb, i, 0))
            accb = add_row_taps(accb, bot, i)
        o_ref[tile_h - _HALO:, :] = accb


def conv2d_forward(x, weight, bias, *, tile_h_max=512):
    """Equivalent of Conv2D.forward: corr2d(x, weight) + bias."""
    h, w = x.shape
    kh, kw = weight.shape
    if kh - 1 > _HALO:
        raise NotImplementedError("row halo supports kernel heights kh <= 9")
    if kh * kw > 512:
        raise NotImplementedError("tap loop is fully unrolled; kh*kw too large")
    out_h, out_w = h - kh + 1, w - kw + 1

    # Lane-dense padded output width; padded input width covers every column
    # shift j in [0, kw) while keeping 128-aligned blocks.
    out_w_pad = _round_up(out_w, _LANE)
    w_in_pad = _round_up(out_w_pad + kw - 1, _LANE)
    halo_rows = _HALO if kh > 1 else 0

    # Generation-aware VMEM budget (v5e/v6e: 128 MiB physical, v7x: 64 MiB/TC).
    try:
        vmem_cap = int(pltpu.get_tpu_info().vmem_capacity_bytes)
    except Exception:  # conservative fallback if the query is unavailable
        vmem_cap = 64 * 1024 * 1024
    vmem_limit = min(int(0.8 * vmem_cap), 100 * 1024 * 1024)
    budget = int(0.75 * vmem_limit)

    def vmem_bytes(th):
        dbuf = 2 * 4 * (th * w_in_pad + halo_rows * w_in_pad + th * out_w_pad)
        live = 4 * th * (2 * w_in_pad + out_w_pad)   # slab + rolled temp + acc
        return dbuf + live

    if vmem_bytes(_HALO) + (8 << 20) > vmem_cap:
        # TODO(synk): add a column-tile grid axis for extremely wide inputs.
        raise NotImplementedError("input too wide for row-only tiling")

    # Row tile: multiple of 8 sublanes, as large as the budget allows, but use
    # at least 2 tiles when possible (DMA/compute overlap + v7x dual-TC work).
    out_h8 = _round_up(out_h, _HALO)
    tile_h = min(_round_up(tile_h_max, _HALO), out_h8)
    if out_h8 >= 2 * _HALO:
        tile_h = min(tile_h, _round_up(pl.cdiv(out_h8, 2), _HALO))
    while tile_h > _HALO and vmem_bytes(tile_h) > budget:
        tile_h = max(_HALO, _round_up(tile_h // 2, _HALO))
    vmem_limit = int(min(vmem_cap, max(vmem_limit, vmem_bytes(tile_h) + (8 << 20))))

    n_tiles = pl.cdiv(out_h, tile_h)
    out_h_pad = n_tiles * tile_h
    h_in_pad = out_h_pad + halo_rows            # >= h because kh - 1 <= _HALO

    xf = x.astype(jnp.float32)
    pad_r, pad_c = h_in_pad - h, w_in_pad - w
    if pad_r or pad_c:                          # only pad when actually needed
        xf = jnp.pad(xf, ((0, pad_r), (0, pad_c)))
    weight = weight.astype(jnp.float32)
    bias = bias.astype(jnp.float32).reshape((1,))

    kernel = functools.partial(corr2d_bias_kernel, kh=kh, kw=kw,
                               out_w_pad=out_w_pad)

    in_specs = [
        pl.BlockSpec(memory_space=pltpu.MemorySpace.SMEM),    # weight taps
        pl.BlockSpec(memory_space=pltpu.MemorySpace.SMEM),    # bias
        pl.BlockSpec((tile_h, w_in_pad), lambda r: (r, 0)),   # main row tile
    ]
    args = [weight, bias, xf]
    if kh > 1:
        halo_block_stride = tile_h // _HALO
        in_specs.append(
            pl.BlockSpec((_HALO, w_in_pad),
                         lambda r: ((r + 1) * halo_block_stride, 0)))
        args.append(xf)                         # same array, 8-row halo window

    cost = pl.CostEstimate(
        flops=2 * kh * kw * out_h_pad * out_w_pad,
        transcendentals=0,
        bytes_accessed=4 * (out_h_pad * w_in_pad
                            + n_tiles * halo_rows * w_in_pad
                            + out_h_pad * out_w_pad))

    y_pad = pl.pallas_call(
        kernel,
        out_shape=jax.ShapeDtypeStruct((out_h_pad, out_w_pad), jnp.float32),
        grid=(n_tiles,),
        in_specs=in_specs,
        out_specs=pl.BlockSpec((tile_h, out_w_pad), lambda r: (r, 0)),
        compiler_params=pltpu.CompilerParams(
            dimension_semantics=("parallel",),
            vmem_limit_bytes=vmem_limit),
        cost_estimate=cost,
    )(*args)

    if (out_h_pad, out_w_pad) != (out_h, out_w):
        y_pad = y_pad[:out_h, :out_w]
    return y_pad


def corr2d_ref(x, k):
    """Pure-JAX reference mirroring the PyTorch corr2d loop."""
    kh, kw = k.shape
    out_h, out_w = x.shape[0] - kh + 1, x.shape[1] - kw + 1
    out = jnp.zeros((out_h, out_w), jnp.float32)
    for i in range(kh):
        for j in range(kw):
            out = out + k[i, j] * x[i:i + out_h, j:j + out_w]
    return out


if __name__ == "__main__":
    key = jax.random.PRNGKey(0)
    kx, kw_key, kb_key = jax.random.split(key, 3)

    # --- Case 1: the d2l setup -- x (6, 8), kernel (1, 2), random params. ---
    H, W = 6, 8
    kernel_size = (1, 2)
    x = jax.random.normal(kx, (H, W), dtype=jnp.float32)
    weight = jax.random.normal(kw_key, kernel_size, dtype=jnp.float32)
    bias = jax.random.normal(kb_key, (1,), dtype=jnp.float32)

    y = jax.block_until_ready(conv2d_forward(x, weight, bias))
    y_ref = corr2d_ref(x, weight) + bias[0]
    assert y.shape == (H - kernel_size[0] + 1, W - kernel_size[1] + 1)
    assert jnp.allclose(y, y_ref, atol=1e-5, rtol=1e-5)

    # --- Case 2: classic d2l edge-detection check (K = [[1, -1]], bias = 0). ---
    x_e = jnp.ones((6, 8), jnp.float32).at[:, 2:6].set(0.0)
    k_e = jnp.array([[1.0, -1.0]], jnp.float32)
    b_e = jnp.zeros((1,), jnp.float32)
    y_e = jax.block_until_ready(conv2d_forward(x_e, k_e, b_e))
    assert jnp.allclose(y_e, corr2d_ref(x_e, k_e), atol=1e-5, rtol=1e-5)

    # --- Case 3: multi-tile grid + row-fixup path (kh > 1, unaligned out_h). ---
    H2, W2 = 51, 70
    kx2, kw2_key, kb2_key = jax.random.split(jax.random.PRNGKey(0), 3)
    x2 = jax.random.normal(kx2, (H2, W2), dtype=jnp.float32)
    w2 = jax.random.normal(kw2_key, (3, 3), dtype=jnp.float32)
    b2 = jax.random.normal(kb2_key, (1,), dtype=jnp.float32)
    y2 = jax.block_until_ready(conv2d_forward(x2, w2, b2, tile_h_max=16))
    y2_ref = corr2d_ref(x2, w2) + b2[0]
    assert y2.shape == (H2 - 2, W2 - 2)
    assert jnp.allclose(y2, y2_ref, atol=1e-4, rtol=1e-4)

    print("KERNEL_OK")
</pallas_src>

<mosaic_0001>
module attributes {stable_mosaic.version = 11 : i64} {
  func.func @corr2d_bias_kernel(%arg0: i32, %arg1: memref<1x2xf32, #tpu.memory_space<smem>>, %arg2: memref<1xf32, #tpu.memory_space<smem>>, %arg3: memref<8x256xf32, #tpu.memory_space<vmem>>, %arg4: memref<8x128xf32, #tpu.memory_space<vmem>>) attributes {dimension_semantics = [#tpu.dimension_semantics<parallel>], iteration_bounds = array<i64: 1>, scalar_prefetch = 0 : i64, scratch_operands = 0 : i64, tpu.core_type = #tpu.core_type<tc>, window_params = [{transform_indices = @transform_0, window_bounds = array<i64: 1, 2>}, {transform_indices = @transform_1, window_bounds = array<i64: 1>}, {transform_indices = @transform_2, window_bounds = array<i64: 8, 256>}, {transform_indices = @transform_3, window_bounds = array<i64: 8, 128>}]} {
    %c0 = arith.constant 0 : index
    %c0_0 = arith.constant 0 : index
    %0 = vector.load %arg3[%c0, %c0_0] : memref<8x256xf32, #tpu.memory_space<vmem>>, vector<8x256xf32>
    %c0_1 = arith.constant 0 : index
    %1 = memref.load %arg2[%c0_1] : memref<1xf32, #tpu.memory_space<smem>>
    %2 = vector.broadcast %1 : f32 to vector<8x128xf32>
    %c0_2 = arith.constant 0 : index
    %c0_3 = arith.constant 0 : index
    %3 = memref.load %arg1[%c0_2, %c0_3] : memref<1x2xf32, #tpu.memory_space<smem>>
    %4 = vector.extract_strided_slice %0 {offsets = [0, 0], sizes = [8, 128], strides = [1, 1]} : vector<8x256xf32> to vector<8x128xf32>
    %5 = vector.broadcast %3 : f32 to vector<8x128xf32>
    %6 = arith.mulf %5, %4 : vector<8x128xf32>
    %7 = arith.addf %2, %6 : vector<8x128xf32>
    %c255_i32 = arith.constant 255 : i32
    %8 = tpu.dynamic_rotate %0 by %c255_i32 dim 1 : vector<8x256xf32>, i32 -> vector<8x256xf32>
    %c0_4 = arith.constant 0 : index
    %c1 = arith.constant 1 : index
    %9 = memref.load %arg1[%c0_4, %c1] : memref<1x2xf32, #tpu.memory_space<smem>>
    %10 = vector.extract_strided_slice %8 {offsets = [0, 0], sizes = [8, 128], strides = [1, 1]} : vector<8x256xf32> to vector<8x128xf32>
    %11 = vector.broadcast %9 : f32 to vector<8x128xf32>
    %12 = arith.mulf %11, %10 : vector<8x128xf32>
    %13 = arith.addf %7, %12 : vector<8x128xf32>
    %c0_5 = arith.constant 0 : index
    %c0_6 = arith.constant 0 : index
    %14 = vector.load %arg4[%c0_5, %c0_6] : memref<8x128xf32, #tpu.memory_space<vmem>>, vector<8x128xf32>
    tpu.vector_store %arg4[%c0_5, %c0_6], %13 {strides = array<i32>} : memref<8x128xf32, #tpu.memory_space<vmem>>, vector<8x128xf32>,
    return
  }
  func.func @transform_0(%arg0: i32) -> (i32, i32) {
    %c0_i32 = arith.constant 0 : i32
    %c0_i32_0 = arith.constant 0 : i32
    %c0_i32_1 = arith.constant 0 : i32
    return %c0_i32, %c0_i32_0 : i32, i32
  }
  func.func @transform_1(%arg0: i32) -> i32 {
    %c0_i32 = arith.constant 0 : i32
    %c0_i32_0 = arith.constant 0 : i32
    return %c0_i32 : i32
  }
  func.func @transform_2(%arg0: i32) -> (i32, i32) {
    %c0_i32 = arith.constant 0 : i32
    %c0_i32_0 = arith.constant 0 : i32
    return %arg0, %c0_i32 : i32, i32
  }
  func.func @transform_3(%arg0: i32) -> (i32, i32) {
    %c0_i32 = arith.constant 0 : i32
    %c0_i32_0 = arith.constant 0 : i32
    return %arg0, %c0_i32 : i32, i32
  }
}

</mosaic_0001>

<bundles_post_ra>
// kernel: tpu_custom_call.1
= control target key start
LH: loop header
LB: loop body
LE: loop exit
PB: predicated region body
PF: predicated region fallthrough
CT: control target
= control target key end

     0   :  { %9 = vsyncpa [#allocation6], 0  ;;  %s199_s0 = inlined_call_operand.vmem [shape: f32[1,2], index: 0, kind: input, shape index: {}]   ;;  %s200_s1 = inlined_call_operand.<no memory space> [shape: f32[1], index: 1, kind: input, shape index: {}]   ;;  %s201_s2 = inlined_call_operand.hbm [shape: f32[8,256], index: 2, kind: input, shape index: {}]   ;;  %s202_s3 = inlined_call_operand.hbm [shape: f32[8,128], index: 3, kind: output, shape index: {}]  }
   0x1   :  { %10 = vsyncpa [#allocation4], 0 }
   0x2   :  { %11 = vsyncpa [#allocation5], 0  ;;  %s18_s14 = sshll.u32 %s199_s0, 4  ;;  %s19_s14 = int_to_ptr.vmem [resolvable:$true] %s18_s14 }
   0x3   :  { %s83_s15 = scalar_lea.vmem %s19_s14, 16  ;;  %p88_p1 = scmp.lt.s32.totalorder %s19_s14, %s19_s14 }
   0x4   :  { %p84_p0 = scmp.ne.s32.totalorder %s19_s14, %s83_s15  ;;  %p89_p2 = scmp.lt.s32.totalorder %s83_s15, %s83_s15 }
   0x6   :  { %p90_p3 = por %p89_p2, %p88_p1 }
   0x8   :  { %p91_p4 = pnand %p90_p3, %p84_p0 }
   0xa   :  { %94 = shalt.err (!%p91_p4)
}
   0xb   :  { %s145_s16 = smov [#allocation3]   ;;  %s146_s17 = smov [#allocation7]  }
   0xc   :  { %21 = dma.vmem_to_smem %s19_s14, 16, %s145_s16, [#allocation6]  }
   0xd   :  { %s30_s18 = sshll.u32 %s146_s17, 4  ;;  %s95_s21 = scalar_lea.hbm %s201_s2, 256  ;;  %s31_s18 = int_to_ptr.vmem [resolvable:$true] %s30_s18 }
   0xe   :  { %p96_p5 = scmp.ne.s32.totalorder %s201_s2, %s95_s21  ;;  %p99_p6 = scmp.lt.u32.totalorder %s95_s21, %s201_s2 }
  0x10   :  { %p101_p7 = pnand %p99_p6, %p96_p5 }
  0x12   :  { %104 = shalt.err (!%p101_p7)
}
  0x13   :  { %s105_s25 = scalar_lea.vmem %s31_s18, 256  ;;  %p110_p9 = scmp.lt.s32.totalorder %s31_s18, %s31_s18 }
  0x14   :  { %p106_p8 = scmp.ne.s32.totalorder %s31_s18, %s105_s25  ;;  %p111_p10 = scmp.lt.s32.totalorder %s105_s25, %s105_s25 }
  0x16   :  { %p112_p11 = por %p111_p10, %p110_p9 }
  0x18   :  { %p113_p12 = pnand %p112_p11, %p106_p8 }
  0x1a   :  { %116 = shalt.err (!%p113_p12)
}
  0x1b   :  { %33 = dma.hbm_to_vmem [thread:$0]  %s201_s2, 256, %s31_s18, [#allocation4]  }
  0x1c   :  { %139 = dma.done.wait [#allocation6], 16  }
  0x1d   :  { %140 = vsyncadd [#allocation6], 4294967280 }
  0x1e   :  { %141 = dma.done.wait [#allocation4], 256  }
  0x1f   :  { %142 = vsyncadd [#allocation4], 4294967040 }
  0x20   :  { %40 = sfence }
  0x21   :  { %v41_v0 = vld [vmem:[#allocation7] sm:$0xff]  ;;  %s147_s28 = smov 127   ;;  %v42_v1 = vld [vmem:[#allocation7 + $0x8] sm:$0xff]  ;;  %s45_s29 = sld [smem:[#allocation3]]  ;;  %v53_v2 = vlaneseq  ;;  %v44_v7 = vstv %s200_s1 }
  0x22   :  { %49 = vrot.lane.b32.xlu0 %v41_v0, %s147_s28  ;;  %s78_s30 = sld [smem:[#allocation3 + $0x1]]  ;;  %s148_s2 = smov [#allocation8]  }
  0x23   :  { %v54_v4 = vand.u32 127, %v53_v2  ;;  %s68_s6 = sshll.u32 %s148_s2, 4  ;;  %s69_s6 = int_to_ptr.vmem [resolvable:$true] %s68_s6 }
  0x24   :  { %s117_s7 = scalar_lea.vmem %s69_s6, 128  ;;  %p122_p0 = scmp.lt.s32.totalorder %s69_s6, %s69_s6 }
  0x25   :  { %vm55_vm0 = vcmp.lt.s32.totalorder %v54_v4, 127  ;;  %p118_p13 = scmp.ne.s32.totalorder %s69_s6, %s117_s7  ;;  %p123_p1 = scmp.lt.s32.totalorder %s117_s7, %s117_s7 }
  0x26   :  { %51 = vrot.lane.b32.xlu0 %v42_v1, %s147_s28 }
  0x27   :  { %v46_v3 = vstv %s45_s29  ;;  %p124_p2 = por %p123_p1, %p122_p0 }
  0x28   :  { %v47_v5 = vmul.f32 %v46_v3, %v41_v0  ;;  %v58_v8 = vstv %s78_s30 }
  0x29   :  { %p125_p3 = pnand %p124_p2, %p118_p13 }
  0x2a   :  { %v48_v10 = vadd.f32 %v47_v5, %v44_v7 }
  0x94   :  { %v50_v6 = vpop.permute.xlu0 %49 }
  0x98   :  { %v52_v9 = vpop.permute.xlu0 %51 }
  0x99   :  { %v56_v11 = vsel %vm55_vm0, %v50_v6, %v52_v9 }
  0x9a   :  { %v59_v12 = vmul.f32 %v58_v8, %v56_v11 }
  0x9c   :  { %v60_v13 = vadd.f32 %v59_v12, %v48_v10 }
  0x9e   :  { %61 = vst [vmem:[#allocation8] sm:$0xff] %v60_v13 }
  0x9f   :  { %128 = shalt.err (!%p125_p3)
}
  0xa0   :  { %s129_s9 = scalar_lea.hbm %s202_s3, 128 }
  0xa1   :  { %p130_p4 = scmp.ne.s32.totalorder %s202_s3, %s129_s9  ;;  %p133_p5 = scmp.lt.u32.totalorder %s129_s9, %s202_s3 }
  0xa3   :  { %p135_p6 = pnand %p133_p5, %p130_p4 }
  0xa5   :  { %138 = shalt.err (!%p135_p6)
}
  0xa6   :  { %71 = dma.vmem_to_hbm [thread:$0]  %s69_s6, 128, %s202_s3, [#allocation5]  }
  0xa7   :  { %143 = dma.done.wait [#allocation5], 128  }
  0xa8   :  { %144 = vsyncadd [#allocation5], 4294967168 }
  0xa9   :  { %75 = vsyncpa [#allocation4], 1 }
  0xaa   :  { %76 = vsyncpa [#allocation5], 1 }
  0xab   :  { %77 = vsyncpa [#allocation6], 1 }

</bundles_post_ra>
